<compile_context>
chip_gen: v7x
topology: tpu7x:2x2x1
jax: 0.10.0
libtpu: 0.0.40
codegen_flags: <defaults>
</compile_context>

<pallas_src>
import jax
import jax.numpy as jnp
from jax.experimental import pallas as pl
from jax.experimental.pallas import tpu as pltpu

_LANE = 128


def _concat_dma_kernel(head_ref, tail_ref, out_ref, sem):
    """head_ref: (N, E1), tail_ref: (N, E2), out_ref: (N, E1+E2) -- all HBM."""
    e1 = head_ref.shape[1]
    e2 = tail_ref.shape[1]
    cp_head = pltpu.make_async_copy(head_ref, out_ref.at[:, pl.ds(0, e1)], sem.at[0])
    cp_tail = pltpu.make_async_copy(tail_ref, out_ref.at[:, pl.ds(e1, e2)], sem.at[1])
    cp_head.start()
    cp_tail.start()
    cp_head.wait()
    cp_tail.wait()


def _concat_chw_kernel(head_ref, tail_ref, out_ref):
    """Fallback VMEM copy: (nb, C1, HW) + (nb, C2, HW) -> (nb, C1+C2, HW)."""
    c1 = head_ref.shape[1]
    out_ref[:, 0:c1, :] = head_ref[...]
    out_ref[:, c1:, :] = tail_ref[...]


def concate_layer_forward(head: jax.Array, tail: jax.Array) -> jax.Array:
    """Concatenate head and tail along axis 1 (channels), NCHW layout."""
    assert head.ndim == 4 and tail.ndim == 4, "expected NCHW tensors"
    n, c1, h, w = head.shape
    n2, c2, h2, w2 = tail.shape
    assert (n, h, w) == (n2, h2, w2), "non-concat dims must match"
    assert head.dtype == tail.dtype

    itemsize = head.dtype.itemsize
    e1 = c1 * h * w  # flat elements per sample (head)
    e2 = c2 * h * w  # flat elements per sample (tail)

    if e1 % _LANE == 0 and e2 % _LANE == 0:
        # ---- Fast path: two direct HBM->HBM DMAs, lane-aligned split --------
        head2 = head.reshape(n, e1)
        tail2 = tail.reshape(n, e2)
        total_bytes = 2 * n * (e1 + e2) * itemsize  # read all + write all

        out2 = pl.pallas_call(
            _concat_dma_kernel,
            out_shape=jax.ShapeDtypeStruct((n, e1 + e2), head.dtype),
            in_specs=[
                pl.BlockSpec(memory_space=pl.ANY),
                pl.BlockSpec(memory_space=pl.ANY),
            ],
            out_specs=pl.BlockSpec(memory_space=pl.ANY),
            scratch_shapes=[pltpu.SemaphoreType.DMA((2,))],
            cost_estimate=pl.CostEstimate(
                flops=0, transcendentals=0, bytes_accessed=total_bytes
            ),
        )(head2, tail2)
        return out2.reshape(n, c1 + c2, h, w)

    # ---- Fallback: lane-dense (N, C, H*W) VMEM copy (correct for any shape) -
    hw = h * w
    head3 = head.reshape(n, c1, hw)
    tail3 = tail.reshape(n, c2, hw)

    bytes_per_sample = 2 * (e1 + e2) * itemsize  # (head+tail) in + out per sample
    # Largest batch chunk that divides n and keeps double-buffered blocks well
    # inside the smallest default scoped-VMEM budget (v5e: 16 MiB).
    budget = 3 * 1024 * 1024
    nb = 1
    for cand in range(n, 0, -1):
        if n % cand == 0 and cand * bytes_per_sample <= budget:
            nb = cand
            break

    cp_kwargs = dict(dimension_semantics=("parallel",))
    needed = 2 * nb * bytes_per_sample + (1 << 20)  # double-buffered + slack
    if needed > (16 << 20):
        # Cap well below v7x's 64 MiB physical VMEM to leave compiler headroom.
        cp_kwargs["vmem_limit_bytes"] = min(needed, 48 << 20)

    out3 = pl.pallas_call(
        _concat_chw_kernel,
        out_shape=jax.ShapeDtypeStruct((n, c1 + c2, hw), head.dtype),
        grid_spec=pl.GridSpec(
            grid=(n // nb,),
            in_specs=[
                pl.BlockSpec((nb, c1, hw), lambda i: (i, 0, 0)),
                pl.BlockSpec((nb, c2, hw), lambda i: (i, 0, 0)),
            ],
            out_specs=pl.BlockSpec((nb, c1 + c2, hw), lambda i: (i, 0, 0)),
        ),
        compiler_params=pltpu.CompilerParams(**cp_kwargs),
    )(head3, tail3)
    return out3.reshape(n, c1 + c2, h, w)


if __name__ == "__main__":
    key = jax.random.PRNGKey(0)
    k1, k2, k3, k4, k5, k6 = jax.random.split(key, 6)

    # Primary case: NCHW conv-feature concat, batch=2, channels=4, spatial=16.
    head = jax.random.normal(k1, (2, 4, 16, 16), dtype=jnp.float32)
    tail = jax.random.normal(k2, (2, 4, 16, 16), dtype=jnp.float32)
    out = jax.block_until_ready(concate_layer_forward(head, tail))
    ref = jnp.concatenate([head, tail], axis=1)
    assert out.shape == (2, 8, 16, 16)
    assert out.dtype == head.dtype
    assert bool(jnp.array_equal(out, ref))

    # Asymmetric channel counts + bf16 (still the direct-DMA path:
    # the split offset is lane-aligned, so no sublane concern).
    head_b = jax.random.normal(k3, (2, 4, 16, 16), dtype=jnp.bfloat16)
    tail_b = jax.random.normal(k4, (2, 8, 16, 16), dtype=jnp.bfloat16)
    out_b = jax.block_until_ready(concate_layer_forward(head_b, tail_b))
    ref_b = jnp.concatenate([head_b, tail_b], axis=1)
    assert out_b.shape == (2, 12, 16, 16)
    assert bool(jnp.array_equal(out_b, ref_b))

    # Per-sample size not a multiple of 128 -> lane-dense VMEM fallback path.
    head_c = jax.random.normal(k5, (2, 3, 8, 12), dtype=jnp.float32)
    tail_c = jax.random.normal(k6, (2, 5, 8, 12), dtype=jnp.float32)
    out_c = jax.block_until_ready(concate_layer_forward(head_c, tail_c))
    ref_c = jnp.concatenate([head_c, tail_c], axis=1)
    assert out_c.shape == (2, 8, 8, 12)
    assert bool(jnp.array_equal(out_c, ref_c))

    print("KERNEL_OK")
</pallas_src>

<mosaic_0001>
module attributes {stable_mosaic.version = 11 : i64} {
  func.func @_concat_dma_kernel(%arg0: memref<2x1024xf32, #tpu.memory_space<any>>, %arg1: memref<2x1024xf32, #tpu.memory_space<any>>, %arg2: memref<2x2048xf32, #tpu.memory_space<any>>, %arg3: memref<2x!tpu.dma_semaphore, #tpu.memory_space<semaphore_mem>>) attributes {dimension_semantics = [], scalar_prefetch = 0 : i64, scratch_operands = 1 : i64, tpu.core_type = #tpu.core_type<tc>} {
    %c0_i32 = arith.constant 0 : i32
    %c0_i32_0 = arith.constant 0 : i32
    %c0_i32_1 = arith.constant 0 : i32
    %0 = tpu.memref_slice %arg2[%c0_i32_0, %c0_i32_1] : memref<2x2048xf32, #tpu.memory_space<any>> -> memref<2x1024xf32, #tpu.memory_space<any>>
    %1 = tpu.memref_slice %arg3[%c0_i32] : memref<2x!tpu.dma_semaphore, #tpu.memory_space<semaphore_mem>> -> memref<1x!tpu.dma_semaphore, #tpu.memory_space<semaphore_mem>>
    %2 = tpu.memref_squeeze %1 : memref<1x!tpu.dma_semaphore, #tpu.memory_space<semaphore_mem>> -> memref<!tpu.dma_semaphore, #tpu.memory_space<semaphore_mem>>
    tpu.enqueue_dma source(%arg0 : memref<2x1024xf32, #tpu.memory_space<any>>) target(%0 : memref<2x1024xf32, #tpu.memory_space<any>>) target_semaphore(%2 : memref<!tpu.dma_semaphore, #tpu.memory_space<semaphore_mem>>)
    %c1_i32 = arith.constant 1 : i32
    %c0_i32_2 = arith.constant 0 : i32
    %c1024_i32 = arith.constant 1024 : i32
    %3 = tpu.memref_slice %arg2[%c0_i32_2, %c1024_i32] : memref<2x2048xf32, #tpu.memory_space<any>> -> memref<2x1024xf32, #tpu.memory_space<any>>
    %4 = tpu.memref_slice %arg3[%c1_i32] : memref<2x!tpu.dma_semaphore, #tpu.memory_space<semaphore_mem>> -> memref<1x!tpu.dma_semaphore, #tpu.memory_space<semaphore_mem>>
    %5 = tpu.memref_squeeze %4 : memref<1x!tpu.dma_semaphore, #tpu.memory_space<semaphore_mem>> -> memref<!tpu.dma_semaphore, #tpu.memory_space<semaphore_mem>>
    tpu.enqueue_dma source(%arg1 : memref<2x1024xf32, #tpu.memory_space<any>>) target(%3 : memref<2x1024xf32, #tpu.memory_space<any>>) target_semaphore(%5 : memref<!tpu.dma_semaphore, #tpu.memory_space<semaphore_mem>>)
    %c0_i32_3 = arith.constant 0 : i32
    %c0_i32_4 = arith.constant 0 : i32
    %c0_i32_5 = arith.constant 0 : i32
    %6 = tpu.memref_slice %arg2[%c0_i32_4, %c0_i32_5] : memref<2x2048xf32, #tpu.memory_space<any>> -> memref<2x1024xf32, #tpu.memory_space<any>>
    %7 = tpu.memref_slice %arg3[%c0_i32_3] : memref<2x!tpu.dma_semaphore, #tpu.memory_space<semaphore_mem>> -> memref<1x!tpu.dma_semaphore, #tpu.memory_space<semaphore_mem>>
    %8 = tpu.memref_squeeze %7 : memref<1x!tpu.dma_semaphore, #tpu.memory_space<semaphore_mem>> -> memref<!tpu.dma_semaphore, #tpu.memory_space<semaphore_mem>>
    tpu.wait_dma2 semaphore(%8 : memref<!tpu.dma_semaphore, #tpu.memory_space<semaphore_mem>>) src(%arg0 : memref<2x1024xf32, #tpu.memory_space<any>>) dst(%6 : memref<2x1024xf32, #tpu.memory_space<any>>)
    %c1_i32_6 = arith.constant 1 : i32
    %c0_i32_7 = arith.constant 0 : i32
    %c1024_i32_8 = arith.constant 1024 : i32
    %9 = tpu.memref_slice %arg2[%c0_i32_7, %c1024_i32_8] : memref<2x2048xf32, #tpu.memory_space<any>> -> memref<2x1024xf32, #tpu.memory_space<any>>
    %10 = tpu.memref_slice %arg3[%c1_i32_6] : memref<2x!tpu.dma_semaphore, #tpu.memory_space<semaphore_mem>> -> memref<1x!tpu.dma_semaphore, #tpu.memory_space<semaphore_mem>>
    %11 = tpu.memref_squeeze %10 : memref<1x!tpu.dma_semaphore, #tpu.memory_space<semaphore_mem>> -> memref<!tpu.dma_semaphore, #tpu.memory_space<semaphore_mem>>
    tpu.wait_dma2 semaphore(%11 : memref<!tpu.dma_semaphore, #tpu.memory_space<semaphore_mem>>) src(%arg1 : memref<2x1024xf32, #tpu.memory_space<any>>) dst(%9 : memref<2x1024xf32, #tpu.memory_space<any>>)
    return
  }
}

</mosaic_0001>

<bundles_post_ra>
// kernel: tpu_custom_call.1
= control target key start
LH: loop header
LB: loop body
LE: loop exit
PB: predicated region body
PF: predicated region fallthrough
CT: control target
= control target key end

     0   :  { %s65_s12 = smov [#allocation2]   ;;  %s66_s13 = smov [#allocation3]   ;;  %s97_s0 = inlined_call_operand.hbm [shape: f32[2,1024], index: 0, kind: input, shape index: {}]   ;;  %s98_s2 = inlined_call_operand.hbm [shape: f32[2,2048], index: 2, kind: output, shape index: {}]   ;;  %s99_s1 = inlined_call_operand.hbm [shape: f32[2,1024], index: 1, kind: input, shape index: {}]  }
   0x1   :  { %s20_s11 = scalar_lea.hbm %s98_s2, 256  ;;  %s67_s14 = smov 0  }
   0x2   :  { %19 = dma.general %s97_s0, 256, %s98_s2, %s65_s12, %s66_s13, [#allocation4], %s67_s14, 0  }
   0x3   :  { %s68_s19 = smov [#allocation2 + $0x1]   ;;  %s69_s20 = smov [#allocation5]  }
   0x4   :  { %34 = dma.general %s99_s1, 256, %s20_s11, %s68_s19, %s69_s20, [#allocation6], %s67_s14, 0  }
   0x5   :  { %61 = dma.done.wait [#allocation2], 256 }
   0x6   :  { %62 = vsyncadd [#allocation2], 4294967040 }
   0x7   :  { %63 = dma.done.wait [#allocation2 + $0x1], 256 }
   0x8   :  { %64 = vsyncadd [#allocation2 + $0x1], 4294967040 }
   0x9   :  { %41 = vsyncmov [#allocation2] }
   0xc   :  { %s42_s23 = vpop.sfrf %41 }
   0xd   :  { %p54_p0 = scmp.ne.s32.totalorder %s42_s23, 0 }
   0xf   :  { %46 = shalt.err (%p54_p0)  }
  0x10   :  { %48 = vsyncmov [#allocation2 + $0x1] }
  0x13   :  { %s49_s24 = vpop.sfrf %48 }
  0x14   :  { %p55_p1 = scmp.ne.s32.totalorder %s49_s24, 0 }
  0x16   :  { %53 = shalt.err (%p55_p1)  }

</bundles_post_ra>
